<compile_context>
chip_gen: v6e
topology: v6e:2x2x1
jax: 0.10.0
libtpu: 0.0.40
codegen_flags: <defaults>
</compile_context>

<pallas_src>
import jax
import jax.numpy as jnp
from jax.experimental import pallas as pl
from jax.experimental.pallas import tpu as pltpu


def _round_up(n, m):
    return ((n + m - 1) // m) * m


# ------------------------------- the kernel ---------------------------------

def _midi_embed_kernel(x_ref, pfold_ref, vfold_ref, wo_row_ref, wd_row_ref,
                       bias_ref, out_ref):
    hi = jax.lax.Precision.HIGHEST

    x = x_ref[...]                                  # [TB, 4] f32
    tb = x.shape[0]
    vp = pfold_ref.shape[0]
    vv = vfold_ref.shape[0]

    pitch_ids = x[:, 0:1].astype(jnp.int32)         # [TB, 1]
    onset = x[:, 1:2]                               # [TB, 1]
    dur = x[:, 2:3]                                 # [TB, 1]
    vel_ids = x[:, 3:4].astype(jnp.int32)           # [TB, 1]

    # Embedding lookup (already fused with the output projection) as
    # one-hot @ folded-table: no gathers, single MXU pass per table.
    onehot_p = (jax.lax.broadcasted_iota(jnp.int32, (tb, vp), 1)
                == pitch_ids).astype(jnp.float32)   # [TB, Vp]
    onehot_v = (jax.lax.broadcasted_iota(jnp.int32, (tb, vv), 1)
                == vel_ids).astype(jnp.float32)     # [TB, Vv]

    acc = jnp.dot(onehot_p, pfold_ref[...],
                  preferred_element_type=jnp.float32, precision=hi)
    acc = acc + jnp.dot(onehot_v, vfold_ref[...],
                        preferred_element_type=jnp.float32, precision=hi)
    # Continuous features: scalar * folded-row + folded-bias (pure VPU).
    acc = acc + onset * wo_row_ref[...] + dur * wd_row_ref[...] + bias_ref[...]
    out_ref[...] = acc.astype(out_ref.dtype)


# ------------------------------ JAX wrapper ----------------------------------

def midi_input_embedding_pallas(x, params, *, token_block=2048,
                                out_dtype=jnp.float32):
    """x: [B, S, 4] float (pitch, onset, duration, velocity). Returns [B, S, model_dim].

    token_block: sweep ~2048 (v5e) / 4096 (v6e) / 8192 (v7x) for peak HBM BW.
    """
    B, S, C = x.shape
    assert C == 4, "expected features [pitch, onset, duration, velocity]"
    hi = jax.lax.Precision.HIGHEST

    ptab = jnp.asarray(params["pitch_emb"], jnp.float32)          # [Vp, E]
    vtab = jnp.asarray(params["velocity_emb"], jnp.float32)       # [Vv, E]
    E = ptab.shape[1]
    w_proj = jnp.asarray(params["w_proj"], jnp.float32)           # torch layout [M, 4E]
    M = w_proj.shape[0]
    assert w_proj.shape[1] == 4 * E

    # ---- fold the output projection into the tables / Linear(1,E) rows ----
    # (constant-folds per parameter set when this wrapper is jitted)
    wt = w_proj.T                                                  # [4E, M]
    w_pitch, w_onset, w_dur, w_vel = (wt[0:E], wt[E:2 * E],
                                      wt[2 * E:3 * E], wt[3 * E:4 * E])
    pfold = jnp.dot(ptab, w_pitch, precision=hi)                   # [Vp, M]
    vfold = jnp.dot(vtab, w_vel, precision=hi)                     # [Vv, M]
    onset_w = jnp.asarray(params["onset_w"], jnp.float32).reshape(1, E)
    onset_b = jnp.asarray(params["onset_b"], jnp.float32).reshape(1, E)
    dur_w = jnp.asarray(params["duration_w"], jnp.float32).reshape(1, E)
    dur_b = jnp.asarray(params["duration_b"], jnp.float32).reshape(1, E)
    b_proj = jnp.asarray(params["b_proj"], jnp.float32).reshape(1, M)
    wo_row = jnp.dot(onset_w, w_onset, precision=hi)               # [1, M]
    wd_row = jnp.dot(dur_w, w_dur, precision=hi)                   # [1, M]
    bias_row = (jnp.dot(onset_b, w_onset, precision=hi)
                + jnp.dot(dur_b, w_dur, precision=hi) + b_proj)    # [1, M]

    # ---- flatten tokens and pad to a sublane-aligned token block ----
    N = B * S
    tb = min(token_block, _round_up(N, 8))
    tb = _round_up(tb, 8)
    n_pad = _round_up(N, tb)
    x_flat = x.reshape(N, 4).astype(jnp.float32)
    if n_pad != N:
        x_flat = jnp.pad(x_flat, ((0, n_pad - N), (0, 0)))

    consts = [pfold, vfold, wo_row, wd_row, bias_row]

    def const_spec(a):
        return pl.BlockSpec(a.shape, lambda i: (0, 0))             # resident, fetched once

    # ---- VMEM budget (lane/sublane-padded, double-buffered tiles) ----
    lane = 128
    vmem_needed = (2 * tb * lane * 4                               # (tb,4) x tile pads lanes->128
                   + 2 * tb * _round_up(M, lane) * 4               # (tb,M) output tile
                   + 2 * sum(_round_up(a.shape[0], 8)
                             * _round_up(a.shape[1], lane) * 4 for a in consts))
    vmem_limit = int(min(48 * 2**20, max(16 * 2**20, vmem_needed + 8 * 2**20)))

    grid = (n_pad // tb,)
    out_flat = pl.pallas_call(
        _midi_embed_kernel,
        out_shape=jax.ShapeDtypeStruct((n_pad, M), out_dtype),
        grid_spec=pltpu.PrefetchScalarGridSpec(
            num_scalar_prefetch=0,
            grid=grid,
            in_specs=[pl.BlockSpec((tb, 4), lambda i: (i, 0))]
                     + [const_spec(a) for a in consts],
            out_specs=pl.BlockSpec((tb, M), lambda i: (i, 0)),
        ),
        compiler_params=pltpu.CompilerParams(
            dimension_semantics=("parallel",),
            vmem_limit_bytes=vmem_limit),
    )(x_flat, *consts)

    return out_flat[:N].reshape(B, S, M)


# ------------------------ parameters & pure-JAX reference --------------------

def init_params(key, pitch_vocab, velocity_vocab, embed_dim, model_dim):
    ks = jax.random.split(key, 8)
    return {
        "pitch_emb": jax.random.normal(ks[0], (pitch_vocab, embed_dim), jnp.float32),
        "velocity_emb": jax.random.normal(ks[1], (velocity_vocab, embed_dim), jnp.float32),
        "onset_w": jax.random.normal(ks[2], (embed_dim, 1), jnp.float32) * 0.5,
        "onset_b": jax.random.normal(ks[3], (embed_dim,), jnp.float32) * 0.5,
        "duration_w": jax.random.normal(ks[4], (embed_dim, 1), jnp.float32) * 0.5,
        "duration_b": jax.random.normal(ks[5], (embed_dim,), jnp.float32) * 0.5,
        "w_proj": jax.random.normal(ks[6], (model_dim, 4 * embed_dim), jnp.float32) * 0.05,
        "b_proj": jax.random.normal(ks[7], (model_dim,), jnp.float32) * 0.05,
    }


def reference_midi_embedding(x, p):
    """Plain-JAX mirror of the PyTorch forward, for verification."""
    hi = jax.lax.Precision.HIGHEST
    pitch = p["pitch_emb"][x[..., 0].astype(jnp.int32)]
    velocity = p["velocity_emb"][x[..., 3].astype(jnp.int32)]
    onset = jnp.dot(x[..., 1:2], p["onset_w"].T, precision=hi) + p["onset_b"]
    duration = jnp.dot(x[..., 2:3], p["duration_w"].T, precision=hi) + p["duration_b"]
    emb = jnp.concatenate([pitch, onset, duration, velocity], axis=-1)
    return jnp.dot(emb, p["w_proj"].T, precision=hi) + p["b_proj"]


# ----------------------------------- main ------------------------------------

if __name__ == "__main__":
    B, S = 2, 8
    pitch_vocab, velocity_vocab = 128, 128
    embed_dim, model_dim = 32, 128

    key = jax.random.PRNGKey(0)
    kp, kv, ko, kd, kw = jax.random.split(key, 5)
    pitch = jax.random.randint(kp, (B, S), 0, pitch_vocab)
    velocity = jax.random.randint(kv, (B, S), 0, velocity_vocab)
    onset = jax.random.uniform(ko, (B, S), jnp.float32, 0.0, 4.0)
    duration = jax.random.uniform(kd, (B, S), jnp.float32, 0.0, 2.0)
    x = jnp.stack([pitch.astype(jnp.float32), onset, duration,
                   velocity.astype(jnp.float32)], axis=-1)          # [B, S, 4]

    params = init_params(kw, pitch_vocab, velocity_vocab, embed_dim, model_dim)

    out = midi_input_embedding_pallas(x, params)
    out = jax.block_until_ready(out)

    ref = reference_midi_embedding(x, params)
    ref = jax.block_until_ready(ref)

    max_diff = float(jnp.max(jnp.abs(out - ref)))
    assert out.shape == (B, S, model_dim), out.shape
    assert max_diff < 1e-3, f"mismatch vs reference: {max_diff}"
    print("KERNEL_OK")
</pallas_src>

<mosaic_0001>
module attributes {stable_mosaic.version = 11 : i64} {
  func.func @_midi_embed_kernel(%arg0: i32, %arg1: memref<16x4xf32, #tpu.memory_space<vmem>>, %arg2: memref<128x128xf32, #tpu.memory_space<vmem>>, %arg3: memref<128x128xf32, #tpu.memory_space<vmem>>, %arg4: memref<1x128xf32, #tpu.memory_space<vmem>>, %arg5: memref<1x128xf32, #tpu.memory_space<vmem>>, %arg6: memref<1x128xf32, #tpu.memory_space<vmem>>, %arg7: memref<16x128xf32, #tpu.memory_space<vmem>>) attributes {dimension_semantics = [#tpu.dimension_semantics<parallel>], iteration_bounds = array<i64: 1>, scalar_prefetch = 0 : i64, scratch_operands = 0 : i64, tpu.core_type = #tpu.core_type<tc>, window_params = [{transform_indices = @transform_0, window_bounds = array<i64: 16, 4>}, {pipeline_mode = #tpu.pipeline_mode<synchronous>, transform_indices = @transform_1, window_bounds = array<i64: 128, 128>}, {pipeline_mode = #tpu.pipeline_mode<synchronous>, transform_indices = @transform_2, window_bounds = array<i64: 128, 128>}, {pipeline_mode = #tpu.pipeline_mode<synchronous>, transform_indices = @transform_3, window_bounds = array<i64: 1, 128>}, {pipeline_mode = #tpu.pipeline_mode<synchronous>, transform_indices = @transform_4, window_bounds = array<i64: 1, 128>}, {pipeline_mode = #tpu.pipeline_mode<synchronous>, transform_indices = @transform_5, window_bounds = array<i64: 1, 128>}, {transform_indices = @transform_6, window_bounds = array<i64: 16, 128>}]} {
    %c0 = arith.constant 0 : index
    %c0_0 = arith.constant 0 : index
    %0 = vector.load %arg1[%c0, %c0_0] : memref<16x4xf32, #tpu.memory_space<vmem>>, vector<16x4xf32>
    %1 = vector.extract_strided_slice %0 {offsets = [0, 0], sizes = [16, 1], strides = [1, 1]} : vector<16x4xf32> to vector<16x1xf32>
    %2 = arith.fptosi %1 : vector<16x1xf32> to vector<16x1xi32>
    %3 = vector.extract_strided_slice %0 {offsets = [0, 1], sizes = [16, 1], strides = [1, 1]} : vector<16x4xf32> to vector<16x1xf32>
    %4 = vector.extract_strided_slice %0 {offsets = [0, 2], sizes = [16, 1], strides = [1, 1]} : vector<16x4xf32> to vector<16x1xf32>
    %5 = vector.extract_strided_slice %0 {offsets = [0, 3], sizes = [16, 1], strides = [1, 1]} : vector<16x4xf32> to vector<16x1xf32>
    %6 = arith.fptosi %5 : vector<16x1xf32> to vector<16x1xi32>
    %7 = tpu.iota {dimensions = array<i32: 1>} : vector<16x128xi32>
    %8 = vector.broadcast %2 : vector<16x1xi32> to vector<16x128xi32>
    %9 = arith.cmpi eq, %7, %8 : vector<16x128xi32>
    %10 = arith.extui %9 : vector<16x128xi1> to vector<16x128xi32>
    %11 = arith.sitofp %10 : vector<16x128xi32> to vector<16x128xf32>
    %12 = tpu.iota {dimensions = array<i32: 1>} : vector<16x128xi32>
    %13 = vector.broadcast %6 : vector<16x1xi32> to vector<16x128xi32>
    %14 = arith.cmpi eq, %12, %13 : vector<16x128xi32>
    %15 = arith.extui %14 : vector<16x128xi1> to vector<16x128xi32>
    %16 = arith.sitofp %15 : vector<16x128xi32> to vector<16x128xf32>
    %c0_1 = arith.constant 0 : index
    %c0_2 = arith.constant 0 : index
    %17 = vector.load %arg2[%c0_1, %c0_2] : memref<128x128xf32, #tpu.memory_space<vmem>>, vector<128x128xf32>
    %cst = arith.constant dense<0.000000e+00> : vector<16x128xf32>
    %18 = tpu.matmul %11, %17, %cst {dimension_numbers = #tpu.dot_dimension_numbers<[1], [0], [0], [1], [0, 0, 1, 1], [], []>, precision = #tpu.contract_precision<fp32>} : vector<16x128xf32>, vector<128x128xf32>, vector<16x128xf32> -> vector<16x128xf32>
    %c0_3 = arith.constant 0 : index
    %c0_4 = arith.constant 0 : index
    %19 = vector.load %arg3[%c0_3, %c0_4] : memref<128x128xf32, #tpu.memory_space<vmem>>, vector<128x128xf32>
    %cst_5 = arith.constant dense<0.000000e+00> : vector<16x128xf32>
    %20 = tpu.matmul %16, %19, %cst_5 {dimension_numbers = #tpu.dot_dimension_numbers<[1], [0], [0], [1], [0, 0, 1, 1], [], []>, precision = #tpu.contract_precision<fp32>} : vector<16x128xf32>, vector<128x128xf32>, vector<16x128xf32> -> vector<16x128xf32>
    %21 = arith.addf %18, %20 : vector<16x128xf32>
    %c0_6 = arith.constant 0 : index
    %c0_7 = arith.constant 0 : index
    %22 = vector.load %arg4[%c0_6, %c0_7] : memref<1x128xf32, #tpu.memory_space<vmem>>, vector<1x128xf32>
    %23 = vector.broadcast %3 : vector<16x1xf32> to vector<16x128xf32>
    %24 = vector.broadcast %22 : vector<1x128xf32> to vector<16x128xf32>
    %25 = arith.mulf %23, %24 : vector<16x128xf32>
    %26 = arith.addf %21, %25 : vector<16x128xf32>
    %c0_8 = arith.constant 0 : index
    %c0_9 = arith.constant 0 : index
    %27 = vector.load %arg5[%c0_8, %c0_9] : memref<1x128xf32, #tpu.memory_space<vmem>>, vector<1x128xf32>
    %28 = vector.broadcast %4 : vector<16x1xf32> to vector<16x128xf32>
    %29 = vector.broadcast %27 : vector<1x128xf32> to vector<16x128xf32>
    %30 = arith.mulf %28, %29 : vector<16x128xf32>
    %31 = arith.addf %26, %30 : vector<16x128xf32>
    %c0_10 = arith.constant 0 : index
    %c0_11 = arith.constant 0 : index
    %32 = vector.load %arg6[%c0_10, %c0_11] : memref<1x128xf32, #tpu.memory_space<vmem>>, vector<1x128xf32>
    %33 = vector.broadcast %32 : vector<1x128xf32> to vector<16x128xf32>
    %34 = arith.addf %31, %33 : vector<16x128xf32>
    %c0_12 = arith.constant 0 : index
    %c0_13 = arith.constant 0 : index
    %35 = vector.load %arg7[%c0_12, %c0_13] : memref<16x128xf32, #tpu.memory_space<vmem>>, vector<16x128xf32>
    tpu.vector_store %arg7[%c0_12, %c0_13], %34 {strides = array<i32>} : memref<16x128xf32, #tpu.memory_space<vmem>>, vector<16x128xf32>,
    return
  }
  func.func @transform_0(%arg0: i32) -> (i32, i32) {
    %c0_i32 = arith.constant 0 : i32
    %c0_i32_0 = arith.constant 0 : i32
    return %arg0, %c0_i32 : i32, i32
  }
  func.func @transform_1(%arg0: i32) -> (i32, i32) {
    %c0_i32 = arith.constant 0 : i32
    %c0_i32_0 = arith.constant 0 : i32
    %c0_i32_1 = arith.constant 0 : i32
    return %c0_i32, %c0_i32_0 : i32, i32
  }
  func.func @transform_2(%arg0: i32) -> (i32, i32) {
    %c0_i32 = arith.constant 0 : i32
    %c0_i32_0 = arith.constant 0 : i32
    %c0_i32_1 = arith.constant 0 : i32
    return %c0_i32, %c0_i32_0 : i32, i32
  }
  func.func @transform_3(%arg0: i32) -> (i32, i32) {
    %c0_i32 = arith.constant 0 : i32
    %c0_i32_0 = arith.constant 0 : i32
    %c0_i32_1 = arith.constant 0 : i32
    return %c0_i32, %c0_i32_0 : i32, i32
  }
  func.func @transform_4(%arg0: i32) -> (i32, i32) {
    %c0_i32 = arith.constant 0 : i32
    %c0_i32_0 = arith.constant 0 : i32
    %c0_i32_1 = arith.constant 0 : i32
    return %c0_i32, %c0_i32_0 : i32, i32
  }
  func.func @transform_5(%arg0: i32) -> (i32, i32) {
    %c0_i32 = arith.constant 0 : i32
    %c0_i32_0 = arith.constant 0 : i32
    %c0_i32_1 = arith.constant 0 : i32
    return %c0_i32, %c0_i32_0 : i32, i32
  }
  func.func @transform_6(%arg0: i32) -> (i32, i32) {
    %c0_i32 = arith.constant 0 : i32
    %c0_i32_0 = arith.constant 0 : i32
    return %arg0, %c0_i32 : i32, i32
  }
}

</mosaic_0001>

<bundles_post_ra>
// kernel: tpu_custom_call.1
= control target key start
LH: loop header
LB: loop body
LE: loop exit
PB: predicated region body
PF: predicated region fallthrough
CT: control target
= control target key end

     0   :  { %11 = vsyncpa [#allocation3], 0  ;;  %s3120_s0 = inlined_call_operand.vmem [shape: f32[16,4], index: 0, kind: input, shape index: {}]   ;;  %s3121_s1 = inlined_call_operand.hbm [shape: f32[128,128], index: 1, kind: input, shape index: {}]   ;;  %s3122_s2 = inlined_call_operand.hbm [shape: f32[128,128], index: 2, kind: input, shape index: {}]   ;;  %s3123_s3 = inlined_call_operand.vmem [shape: f32[1,128], index: 3, kind: input, shape index: {}]   ;;  %s3124_s4 = inlined_call_operand.vmem [shape: f32[1,128], index: 4, kind: input, shape index: {}]   ;;  %s3125_s5 = inlined_call_operand.vmem [shape: f32[1,128], index: 5, kind: input, shape index: {}]   ;;  %s3126_s6 = inlined_call_operand.hbm [shape: f32[16,128], index: 6, kind: output, shape index: {}]  }
   0x1   :  { %12 = vsyncpa [#allocation6], 0 }
   0x2   :  { %13 = vsyncpa [#allocation4], 0  ;;  %s2295_s21 = smov [#allocation2]  }
   0x3   :  { %s21_s22 = sshll.u32 %s2295_s21, 4  ;;  %s22_s22 = int_to_ptr.vmem [resolvable:$true] %s21_s22 }
   0x4   :  { %s2237_s23 = scalar_lea.vmem %s22_s22, 2048  ;;  %p2242_p1 = scmp.lt.s32.totalorder %s22_s22, %s22_s22 }
   0x5   :  { %p2238_p0 = scmp.ne.s32.totalorder %s22_s22, %s2237_s23  ;;  %p2243_p2 = scmp.lt.s32.totalorder %s2237_s23, %s2237_s23 }
   0x7   :  { %p2244_p3 = por %p2243_p2, %p2242_p1 }
   0x9   :  { %p2245_p4 = pnand %p2244_p3, %p2238_p0 }
   0xb   :  { %2248 = shalt.err (!%p2245_p4)
}
   0xc   :  { %s2296_s24 = smov 128   ;;  %s2297_s25 = smov 8  }
   0xd   :  { %27 = dma.hbm_to_vmem [thread:$0]  %s3121_s1, 2048, %s22_s22, [#allocation3], %s2296_s24, %s2296_s24, %s2297_s25  }
   0xe   :  { %s2298_s28 = smov [#allocation5]  }
   0xf   :  { %s33_s29 = sshll.u32 %s2298_s28, 4  ;;  %s34_s29 = int_to_ptr.vmem [resolvable:$true] %s33_s29 }
  0x10   :  { %s2257_s30 = scalar_lea.vmem %s34_s29, 2048  ;;  %p2262_p6 = scmp.lt.s32.totalorder %s34_s29, %s34_s29 }
  0x11   :  { %p2258_p5 = scmp.ne.s32.totalorder %s34_s29, %s2257_s30  ;;  %p2263_p7 = scmp.lt.s32.totalorder %s2257_s30, %s2257_s30 }
  0x13   :  { %p2264_p8 = por %p2263_p7, %p2262_p6 }
  0x15   :  { %p2265_p9 = pnand %p2264_p8, %p2258_p5 }
  0x17   :  { %2268 = shalt.err (!%p2265_p9)
}
  0x18   :  { %39 = dma.hbm_to_vmem [thread:$0]  %s3122_s2, 2048, %s34_s29, [#allocation6], %s2296_s24, %s2296_s24, %s2297_s25  }
  0x19   :  { %2289 = dma.done.wait [#allocation3], 2048  }
  0x1a   :  { %2290 = vsyncadd [#allocation3], 4294965248 }
  0x1b   :  { %2291 = dma.done.wait [#allocation6], 2048  }
  0x1c   :  { %2292 = vsyncadd [#allocation6], 4294965248  ;;  %v2299_v0 = vmov 3   ;;  %v2300_v1 = vmov 0   ;;  %v52_v2 = vld [vmem:[%s3120_s0] sm:$0xff]  ;;  %v53_v3 = vld [vmem:[%s3120_s0 + $0x8] sm:$0xff] }
  0x1d   :  { %2221 = vset.pattern.permute.xlu0 %v2299_v0  ;;  %2222 = vset.pattern.permute.xlu1 %v2300_v1  ;;  %v113_v4 = vld [vmem:[#allocation5 + $0x78] sm:$0xff]  ;;  %v2206_v5 = vtrunc.f32 %v52_v2  ;;  %v2208_v6 = vtrunc.f32 %v53_v3  ;;  %v112_v8 = vld [vmem:[#allocation5 + $0x70] sm:$0xff]  ;;  %v111_v9 = vld [vmem:[#allocation5 + $0x68] sm:$0xff] }
  0x1e   :  { %v2359_v7 = vand.u32 4294901760, %v113_v4  ;;  %v110_v10 = vld [vmem:[#allocation5 + $0x60] sm:$0xff]  ;;  %v2361_v11 = vand.u32 4294901760, %v112_v8  ;;  %v2363_v12 = vand.u32 4294901760, %v111_v9  ;;  %v109_v14 = vld [vmem:[#allocation5 + $0x58] sm:$0xff]  ;;  %v108_v15 = vld [vmem:[#allocation5 + $0x50] sm:$0xff] }
  0x1f   :  { %v2365_v13 = vand.u32 4294901760, %v110_v10  ;;  %v107_v16 = vld [vmem:[#allocation5 + $0x48] sm:$0xff]  ;;  %v2207_v17 = vcvt.f32.s32 %v2206_v5  ;;  %v2209_v18 = vcvt.f32.s32 %v2208_v6  ;;  %v2370_v20 = vand.u32 4294901760, %v109_v14  ;;  %v106_v21 = vld [vmem:[#allocation5 + $0x40] sm:$0xff]  ;;  %v105_v40 = vld [vmem:[#allocation5 + $0x38] sm:$0xff] }
  0x20   :  { %v2368_v19 = vsub.f32 %v113_v4, %v2359_v7  ;;  %1786 = vmatprep.subr.mxu0 %v2359_v7  ;;  %v2374_v22 = vsub.f32 %v112_v8, %v2361_v11  ;;  %v2377_v23 = vsub.f32 %v111_v9, %v2363_v12  ;;  %v2383_v25 = vand.u32 4294901760, %v108_v15  ;;  %v104_v44 = vld [vmem:[#allocation5 + $0x30] sm:$0xff]  ;;  %v103_v45 = vld [vmem:[#allocation5 + $0x28] sm:$0xff]  ;;  %v102_v48 = vld [vmem:[#allocation5 + $0x20] sm:$0xff] }
  0x21   :  { %v2380_v24 = vsub.f32 %v110_v10, %v2365_v13  ;;  %1787 = vmatpush3.msra.mxu0 %v2359_v7  ;;  %71 = vperm.xlu0 %2221, %v2207_v17   ;;  %v2389_v27 = vsub.f32 %v109_v14, %v2370_v20  ;;  %v2391_v28 = vand.u32 4294901760, %v107_v16  ;;  %v2393_v29 = vand.u32 4294901760, %v106_v21  ;;  %v101_v55 = vld [vmem:[#allocation5 + $0x18] sm:$0xff]  ;;  %v100_v62 = vld [vmem:[#allocation5 + $0x10] sm:$0xff]  ;;  %v99_v4 = vld [vmem:[#allocation5 + $0x8] sm:$0xff] }
  0x22   :  { %59 = vperm.xlu1 %2222, %v2207_v17   ;;  %v2386_v26 = vand.u32 4294901760, %v2368_v19  ;;  %v2396_v30 = vand.u32 4294901760, %v2374_v22  ;;  %v2399_v31 = vand.u32 4294901760, %v2377_v23  ;;  %v2405_v33 = vsub.f32 %v108_v15, %v2383_v25  ;;  %1788 = vmatprep.subr.mxu0 %v2361_v11  ;;  %v98_v14 = vld [vmem:[#allocation5] sm:$0xff] }
  0x23   :  { %v2402_v32 = vand.u32 4294901760, %v2380_v24  ;;  %v2411_v35 = vand.u32 4294901760, %v2389_v27  ;;  %1789 = vmatpush3.msra.mxu0 %v2361_v11  ;;  %v2415_v36 = vsub.f32 %v107_v16, %v2391_v28  ;;  %v2423_v39 = vsub.f32 %v106_v21, %v2393_v29 }
  0x24   :  { %v219_v34 = vsub.f32 %v2368_v19, %v2386_v26  ;;  %v226_v37 = vsub.f32 %v2374_v22, %v2396_v30  ;;  %v233_v38 = vsub.f32 %v2377_v23, %v2399_v31  ;;  %1790 = vmatprep.subr.mxu0 %v2363_v12  ;;  %v2428_v43 = vand.u32 4294901760, %v2405_v33 }
  0x25   :  { %74 = vperm.xlu0 %2221, %v2209_v18   ;;  %v240_v42 = vsub.f32 %v2380_v24, %v2402_v32  ;;  %v2431_v47 = vand.u32 4294901760, %v2415_v36  ;;  %1791 = vmatpush3.msra.mxu0 %v2363_v12  ;;  %v247_v50 = vsub.f32 %v2389_v27, %v2411_v35  ;;  %v2437_v51 = vand.u32 4294901760, %v105_v40 }
  0x26   :  { %62 = vperm.xlu1 %2222, %v2209_v18   ;;  %v220_v41 = vand.u32 4294901760, %v219_v34  ;;  %v227_v46 = vand.u32 4294901760, %v226_v37  ;;  %v234_v49 = vand.u32 4294901760, %v233_v38  ;;  %1792 = vmatprep.subr.mxu0 %v2365_v13  ;;  %v2440_v52 = vand.u32 4294901760, %v2423_v39 }
  0x27   :  { %1793 = vmatpush3.msra.mxu0 %v2365_v13  ;;  %v2443_v53 = vand.u32 4294901760, %v104_v44  ;;  %v2445_v54 = vand.u32 4294901760, %v103_v45  ;;  %v241_v56 = vand.u32 4294901760, %v240_v42  ;;  %v254_v57 = vsub.f32 %v2405_v33, %v2428_v43 }
  0x28   :  { %1821 = vmatprep.subr.mxu1 %v220_v41  ;;  %v2450_v58 = vsub.f32 %v105_v40, %v2437_v51  ;;  %1794 = vmatprep.subr.mxu0 %v2370_v20  ;;  %v2453_v59 = vand.u32 4294901760, %v102_v48  ;;  %v261_v60 = vsub.f32 %v2415_v36, %v2431_v47  ;;  %v248_v63 = vand.u32 4294901760, %v247_v50 }
  0x29   :  { %1822 = vmatpush3.msra.mxu1 %v220_v41  ;;  %1795 = vmatpush3.msra.mxu0 %v2370_v20  ;;  %v2459_v61 = vsub.f32 %v104_v44, %v2443_v53  ;;  %v2466_v1 = vsub.f32 %v103_v45, %v2445_v54  ;;  %v2468_v2 = vand.u32 4294901760, %v101_v55  ;;  %v268_v3 = vsub.f32 %v2423_v39, %v2440_v52 }
  0x2a   :  { %1823 = vmatprep.subr.mxu1 %v227_v46  ;;  %v2462_v0 = vand.u32 4294901760, %v2450_v58  ;;  %1796 = vmatprep.subr.mxu0 %v2383_v25  ;;  %v255_v5 = vand.u32 4294901760, %v254_v57  ;;  %v2478_v8 = vsub.f32 %v102_v48, %v2453_v59  ;;  %v2480_v9 = vand.u32 4294901760, %v100_v62 }
  0x2b   :  { %1824 = vmatpush3.msra.mxu1 %v227_v46  ;;  %1797 = vmatpush3.msra.mxu0 %v2383_v25  ;;  %v2474_v6 = vand.u32 4294901760, %v2459_v61  ;;  %v262_v10 = vand.u32 4294901760, %v261_v60  ;;  %v2486_v16 = vand.u32 4294901760, %v2466_v1  ;;  %v2490_v17 = vsub.f32 %v101_v55, %v2468_v2 }
  0x2c   :  { %1825 = vmatprep.subr.mxu1 %v234_v49  ;;  %1798 = vmatprep.subr.mxu0 %v2391_v28  ;;  %v275_v15 = vsub.f32 %v2450_v58, %v2462_v0  ;;  %v2492_v18 = vand.u32 4294901760, %v99_v4  ;;  %v269_v21 = vand.u32 4294901760, %v268_v3  ;;  %v2498_v37 = vand.u32 4294901760, %v2478_v8 }
  0x2d   :  { %1826 = vmatpush3.msra.mxu1 %v234_v49  ;;  %1799 = vmatpush3.msra.mxu0 %v2391_v28  ;;  %v282_v34 = vsub.f32 %v2459_v61, %v2474_v6  ;;  %v2502_v38 = vsub.f32 %v100_v62, %v2480_v9  ;;  %v2504_v40 = vand.u32 4294901760, %v98_v14  ;;  %v289_v42 = vsub.f32 %v2466_v1, %v2486_v16 }
  0x2e   :  { %1827 = vmatprep.subr.mxu1 %v241_v56  ;;  %1800 = vmatprep.subr.mxu0 %v2393_v29  ;;  %v276_v41 = vand.u32 4294901760, %v275_v15  ;;  %v2510_v44 = vand.u32 4294901760, %v2490_v17  ;;  %v2514_v45 = vsub.f32 %v99_v4, %v2492_v18  ;;  %v296_v48 = vsub.f32 %v2478_v8, %v2498_v37 }
  0x2f   :  { %1828 = vmatpush3.msra.mxu1 %v241_v56  ;;  %1801 = vmatpush3.msra.mxu0 %v2393_v29  ;;  %v283_v46 = vand.u32 4294901760, %v282_v34  ;;  %v2520_v49 = vand.u32 4294901760, %v2502_v38  ;;  %v2524_v50 = vsub.f32 %v98_v14, %v2504_v40  ;;  %v290_v55 = vand.u32 4294901760, %v289_v42 }
  0x30   :  { %1829 = vmatprep.subr.mxu1 %v248_v63  ;;  %1802 = vmatprep.subr.mxu0 %v2437_v51  ;;  %v303_v56 = vsub.f32 %v2490_v17, %v2510_v44  ;;  %v2530_v57 = vand.u32 4294901760, %v2514_v45  ;;  %v297_v60 = vand.u32 4294901760, %v296_v48 }
  0x31   :  { %1830 = vmatpush3.msra.mxu1 %v248_v63  ;;  %1803 = vmatpush3.msra.mxu0 %v2437_v51  ;;  %v310_v62 = vsub.f32 %v2502_v38, %v2520_v49  ;;  %v2537_v63 = vand.u32 4294901760, %v2524_v50 }
  0x32   :  { %1831 = vmatprep.subr.mxu1 %v255_v5  ;;  %1804 = vmatprep.subr.mxu0 %v2443_v53  ;;  %v304_v3 = vand.u32 4294901760, %v303_v56  ;;  %v317_v4 = vsub.f32 %v2514_v45, %v2530_v57 }
  0x33   :  { %1832 = vmatpush3.msra.mxu1 %v255_v5  ;;  %1805 = vmatpush3.msra.mxu0 %v2443_v53  ;;  %v311_v5 = vand.u32 4294901760, %v310_v62 }
  0x34   :  { %1833 = vmatprep.subr.mxu1 %v262_v10  ;;  %1806 = vmatprep.subr.mxu0 %v2445_v54  ;;  %v318_v14 = vand.u32 4294901760, %v317_v4 }
  0x35   :  { %1834 = vmatpush3.msra.mxu1 %v262_v10  ;;  %1807 = vmatpush3.msra.mxu0 %v2445_v54  ;;  %v324_v10 = vsub.f32 %v2524_v50, %v2537_v63 }
  0x36   :  { %1835 = vmatprep.subr.mxu1 %v269_v21  ;;  %1808 = vmatprep.subr.mxu0 %v2453_v59 }
  0x37   :  { %1836 = vmatpush3.msra.mxu1 %v269_v21  ;;  %1809 = vmatpush3.msra.mxu0 %v2453_v59  ;;  %v325_v15 = vand.u32 4294901760, %v324_v10  ;;  %v56_v21 = vlaneseq }
  0x38   :  { %1837 = vmatprep.subr.mxu1 %v276_v41  ;;  %1810 = vmatprep.subr.mxu0 %v2468_v2 }
  0x39   :  { %1838 = vmatpush3.msra.mxu1 %v276_v41  ;;  %1811 = vmatpush3.msra.mxu0 %v2468_v2  ;;  %v2553_v34 = vand.u32 127, %v56_v21 }
  0x3a   :  { %1839 = vmatprep.subr.mxu1 %v283_v46  ;;  %1812 = vmatprep.subr.mxu0 %v2480_v9 }
  0x3b   :  { %1840 = vmatpush3.msra.mxu1 %v283_v46  ;;  %1813 = vmatpush3.msra.mxu0 %v2480_v9  ;;  %v2301_v46 = vmov 0.0  }
  0x3c   :  { %1841 = vmatprep.subr.mxu1 %v290_v55  ;;  %1814 = vmatprep.subr.mxu0 %v2492_v18 }
  0x3d   :  { %1842 = vmatpush3.msra.mxu1 %v290_v55  ;;  %1815 = vmatpush3.msra.mxu0 %v2492_v18  ;;  %v2302_v55 = vmov 1.0  }
  0x3e   :  { %1843 = vmatprep.subr.mxu1 %v297_v60  ;;  %1816 = vmatprep.subr.mxu0 %v2504_v40 }
  0x3f   :  { %1844 = vmatpush3.msra.mxu1 %v297_v60  ;;  %1817 = vmatpush3.msra.mxu0 %v2504_v40 }
  0x40   :  { %1845 = vmatprep.subr.mxu1 %v304_v3  ;;  %1856 = vmatprep.subr.mxu0 %v2368_v19 }
  0x41   :  { %1846 = vmatpush3.msra.mxu1 %v304_v3 }
  0x42   :  { %1847 = vmatprep.subr.mxu1 %v311_v5 }
  0x43   :  { %1848 = vmatpush3.msra.mxu1 %v311_v5 }
  0x44   :  { %1849 = vmatprep.subr.mxu1 %v318_v14 }
  0x45   :  { %1850 = vmatpush3.msra.mxu1 %v318_v14 }
  0x46   :  { %1851 = vmatprep.subr.mxu1 %v325_v15 }
  0x47   :  { %1852 = vmatpush3.msra.mxu1 %v325_v15 }
  0x48   :  { %1891 = vmatprep.subr.mxu1 %v2359_v7 }
  0x9c   :  { %v2555_v41 = vpop.permute.xlu0 %71 }
  0x9d   :  { %v2557_v42 = vpop.permute.xlu1 %59  ;;  %vm76_vm0 = vcmp.eq.s32.totalorder %v2553_v34, %v2555_v41 }
  0x9e   :  { %vm64_vm1 = vcmp.eq.s32.totalorder %v2553_v34, %v2557_v42  ;;  %v1553_v48 = vsel %vm76_vm0, 1.0, %v2301_v46  ;;  %1853 = vmatprep.mubr.msk.f32.mxu1 %vm76_vm0, %v2302_v55  ;;  %v2303_v42 = vmov 1  }
  0x9f   :  { %v2575_v56 = vsel %vm64_vm1, 1.0, %v2301_v46  ;;  %v196_v60 = vsub.f32 %v1553_v48, %v1553_v48  ;;  %2223 = vset.pattern.permute.xlu0 %v2303_v42  ;;  %2224 = vset.pattern.permute.xlu1 %v2303_v42 }
  0xa0   :  { %v2577_v62 = vpop.permute.xlu0 %74 }
  0xa1   :  { %vm77_vm2 = vcmp.eq.s32.totalorder %v2553_v34, %v2577_v62  ;;  %v197_v3 = vand.u32 4294901760, %v196_v60 }
  0xa2   :  { %v1554_v4 = vsel %vm77_vm2, 1.0, %v2301_v46  ;;  %1854 = vmatmul.mubr.msk.f32.vlgmr.msra.gmra.mxu1 %vm77_vm2, %v2302_v55 }
  0xa3   :  { %v2589_v5 = vsub.f32 %v1554_v4, %v1554_v4  ;;  %1892 = vmatpush3.msra.mxu1 %v2359_v7  ;;  %1923 = vmatprep.mubr.f32.mxu1 %v197_v3  ;;  %v198_v10 = vsub.f32 %v196_v60, %v197_v3 }
  0xa4   :  { %1893 = vmatprep.subr.mxu1 %v2361_v11 }
  0xa5   :  { %1894 = vmatpush3.msra.mxu1 %v2361_v11  ;;  %v199_v14 = vand.u32 4294901760, %v198_v10  ;;  %v207_v15 = vand.u32 4294901760, %v2589_v5  ;;  %v85_v10 = vld [vmem:[#allocation2 + $0x18] sm:$0xff] }
  0xa6   :  { %1895 = vmatprep.subr.mxu1 %v2363_v12 }
  0xa7   :  { %1896 = vmatpush3.msra.mxu1 %v2363_v12  ;;  %1818 = vmatprep.mubr.f32.mxu0 %v199_v14  ;;  %v208_v21 = vsub.f32 %v2589_v5, %v207_v15 }
  0xa8   :  { %1897 = vmatprep.subr.mxu1 %v2365_v13 }
  0xa9   :  { %1898 = vmatpush3.msra.mxu1 %v2365_v13  ;;  %v209_v48 = vand.u32 4294901760, %v208_v21 }
  0xaa   :  { %1899 = vmatprep.subr.mxu1 %v2370_v20 }
  0xab   :  { %1900 = vmatpush3.msra.mxu1 %v2370_v20  ;;  %1819 = vmatmul.mubr.f32.vlgmr.msra.gmra.mxu0 %v209_v48 }
  0xac   :  { %1857 = vmatpush3.msra.mxu0 %v2368_v19  ;;  %1901 = vmatprep.subr.mxu1 %v2383_v25 }
  0xad   :  { %1858 = vmatprep.subr.mxu0 %v2374_v22  ;;  %1888 = vmatprep.mubr.f32.mxu0 %v196_v60 }
  0xae   :  { %1902 = vmatpush3.msra.mxu1 %v2383_v25  ;;  %1859 = vmatpush3.msra.mxu0 %v2374_v22 }
  0xaf   :  { %1903 = vmatprep.subr.mxu1 %v2391_v28  ;;  %1860 = vmatprep.subr.mxu0 %v2377_v23 }
  0xb0   :  { %1904 = vmatpush3.msra.mxu1 %v2391_v28  ;;  %1861 = vmatpush3.msra.mxu0 %v2377_v23 }
  0xb1   :  { %1905 = vmatprep.subr.mxu1 %v2393_v29  ;;  %1862 = vmatprep.subr.mxu0 %v2380_v24 }
  0xb2   :  { %1906 = vmatpush3.msra.mxu1 %v2393_v29  ;;  %1863 = vmatpush3.msra.mxu0 %v2380_v24  ;;  %v93_v24 = vld [vmem:[#allocation2 + $0x58] sm:$0xff] }
  0xb3   :  { %1907 = vmatprep.subr.mxu1 %v2437_v51  ;;  %1864 = vmatprep.subr.mxu0 %v2389_v27 }
  0xb4   :  { %1908 = vmatpush3.msra.mxu1 %v2437_v51  ;;  %1865 = vmatpush3.msra.mxu0 %v2389_v27 }
  0xb5   :  { %1909 = vmatprep.subr.mxu1 %v2443_v53  ;;  %1866 = vmatprep.subr.mxu0 %v2405_v33 }
  0xb6   :  { %1910 = vmatpush3.msra.mxu1 %v2443_v53  ;;  %1867 = vmatpush3.msra.mxu0 %v2405_v33 }
  0xb7   :  { %1911 = vmatprep.subr.mxu1 %v2445_v54  ;;  %1868 = vmatprep.subr.mxu0 %v2415_v36 }
  0xb8   :  { %1912 = vmatpush3.msra.mxu1 %v2445_v54  ;;  %1869 = vmatpush3.msra.mxu0 %v2415_v36  ;;  %v90_v36 = vld [vmem:[#allocation2 + $0x40] sm:$0xff] }
  0xb9   :  { %1913 = vmatprep.subr.mxu1 %v2453_v59  ;;  %1870 = vmatprep.subr.mxu0 %v2423_v39 }
  0xba   :  { %1914 = vmatpush3.msra.mxu1 %v2453_v59  ;;  %1871 = vmatpush3.msra.mxu0 %v2423_v39 }
  0xbb   :  { %1915 = vmatprep.subr.mxu1 %v2468_v2  ;;  %1872 = vmatprep.subr.mxu0 %v2450_v58 }
  0xbc   :  { %1916 = vmatpush3.msra.mxu1 %v2468_v2  ;;  %1873 = vmatpush3.msra.mxu0 %v2450_v58  ;;  %v89_v58 = vld [vmem:[#allocation2 + $0x38] sm:$0xff] }
  0xbd   :  { %1917 = vmatprep.subr.mxu1 %v2480_v9  ;;  %1874 = vmatprep.subr.mxu0 %v2459_v61 }
  0xbe   :  { %1918 = vmatpush3.msra.mxu1 %v2480_v9  ;;  %1875 = vmatpush3.msra.mxu0 %v2459_v61 }
  0xbf   :  { %1919 = vmatprep.subr.mxu1 %v2492_v18  ;;  %1876 = vmatprep.subr.mxu0 %v2466_v1 }
  0xc0   :  { %1920 = vmatpush3.msra.mxu1 %v2492_v18  ;;  %1877 = vmatpush3.msra.mxu0 %v2466_v1 }
  0xc1   :  { %1921 = vmatprep.subr.mxu1 %v2504_v40  ;;  %1878 = vmatprep.subr.mxu0 %v2478_v8 }
  0xc2   :  { %1922 = vmatpush3.msra.mxu1 %v2504_v40  ;;  %1879 = vmatpush3.msra.mxu0 %v2478_v8  ;;  %v88_v8 = vld [vmem:[#allocation2 + $0x30] sm:$0xff] }
  0xc3   :  { %1924 = vmatmul.mubr.f32.vlgmr.msra.gmra.mxu1 %v207_v15  ;;  %1961 = vmatprep.subr.mxu1 %v2359_v7 }
  0xc4   :  { %1880 = vmatprep.subr.mxu0 %v2490_v17  ;;  %1962 = vmatpush3.msra.mxu1 %v2359_v7  ;;  %v97_v7 = vld [vmem:[#allocation2 + $0x78] sm:$0xff] }
  0xc5   :  { %1993 = vmatprep.mubr.msk.f32.mxu1 %vm76_vm0, %v2302_v55  ;;  %1881 = vmatpush3.msra.mxu0 %v2490_v17 }
  0xc6   :  { %1963 = vmatprep.subr.mxu1 %v2361_v11  ;;  %1882 = vmatprep.subr.mxu0 %v2502_v38 }
  0xc7   :  { %1964 = vmatpush3.msra.mxu1 %v2361_v11  ;;  %1883 = vmatpush3.msra.mxu0 %v2502_v38  ;;  %v96_v11 = vld [vmem:[#allocation2 + $0x70] sm:$0xff] }
  0xc8   :  { %1965 = vmatprep.subr.mxu1 %v2363_v12  ;;  %1884 = vmatprep.subr.mxu0 %v2514_v45  ;;  %v2688_v19 = vand.u32 4294901760, %v96_v11 }
  0xc9   :  { %1966 = vmatpush3.msra.mxu1 %v2363_v12  ;;  %1885 = vmatpush3.msra.mxu0 %v2514_v45  ;;  %v2682_v12 = vand.u32 4294901760, %v97_v7  ;;  %v87_v45 = vld [vmem:[#allocation2 + $0x28] sm:$0xff] }
  0xca   :  { %1967 = vmatprep.subr.mxu1 %v2365_v13  ;;  %1886 = vmatprep.subr.mxu0 %v2524_v50  ;;  %v2803_v3 = vand.u32 4294901760, %v87_v45 }
  0xcb   :  { %1968 = vmatpush3.msra.mxu1 %v2365_v13  ;;  %1887 = vmatpush3.msra.mxu0 %v2524_v50  ;;  %v95_v13 = vld [vmem:[#allocation2 + $0x68] sm:$0xff]  ;;  %v2695_v22 = vsub.f32 %v97_v7, %v2682_v12  ;;  %v84_v7 = vld [vmem:[#allocation2 + $0x10] sm:$0xff] }
  0xcc   :  { %1969 = vmatprep.subr.mxu1 %v2370_v20  ;;  %1889 = vmatmul.mubr.f32.vlgmr.msra.gmra.mxu0 %v2589_v5  ;;  %v2697_v23 = vand.u32 4294901760, %v95_v13 }
  0xcd   :  { %1926 = vmatprep.subr.mxu0 %v2386_v26  ;;  %1970 = vmatpush3.msra.mxu1 %v2370_v20  ;;  %v94_v20 = vld [vmem:[#allocation2 + $0x60] sm:$0xff]  ;;  %v2713_v27 = vand.u32 4294901760, %v2695_v22 }
  0xce   :  { %1927 = vmatpush3.msra.mxu0 %v2386_v26  ;;  %1958 = vmatprep.mubr.msk.f32.mxu0 %vm76_vm0, %v2302_v55  ;;  %v2706_v26 = vand.u32 4294901760, %v94_v20 }
  0xcf   :  { %1971 = vmatprep.subr.mxu1 %v2383_v25  ;;  %1928 = vmatprep.subr.mxu0 %v2396_v30  ;;  %v903_v39 = vsub.f32 %v2695_v22, %v2713_v27 }
  0xd0   :  { %1972 = vmatpush3.msra.mxu1 %v2383_v25  ;;  %1929 = vmatpush3.msra.mxu0 %v2396_v30  ;;  %v2704_v25 = vsub.f32 %v96_v11, %v2688_v19  ;;  %v92_v30 = vld [vmem:[#allocation2 + $0x50] sm:$0xff]  ;;  %v2728_v33 = vsub.f32 %v94_v20, %v2706_v26  ;;  %v2827_v20 = vand.u32 4294901760, %v85_v10 }
  0xd1   :  { %1973 = vmatprep.subr.mxu1 %v2391_v28  ;;  %1930 = vmatprep.subr.mxu0 %v2399_v31  ;;  %v904_v61 = vand.u32 4294901760, %v903_v39  ;;  %v2839_v39 = vand.u32 4294901760, %v84_v7 }
  0xd2   :  { %1974 = vmatpush3.msra.mxu1 %v2391_v28  ;;  %1931 = vmatpush3.msra.mxu0 %v2399_v31  ;;  %v2716_v28 = vsub.f32 %v95_v13, %v2697_v23  ;;  %v91_v31 = vld [vmem:[#allocation2 + $0x48] sm:$0xff]  ;;  %v2825_v13 = vsub.f32 %v87_v45, %v2803_v3 }
  0xd3   :  { %1975 = vmatprep.subr.mxu1 %v2393_v29  ;;  %1932 = vmatprep.subr.mxu0 %v2402_v32 }
  0xd4   :  { %1976 = vmatpush3.msra.mxu1 %v2393_v29  ;;  %1933 = vmatpush3.msra.mxu0 %v2402_v32  ;;  %v2718_v29 = vand.u32 4294901760, %v93_v24  ;;  %v2725_v32 = vand.u32 4294901760, %v2704_v25 }
  0xd5   :  { %1977 = vmatprep.subr.mxu1 %v2437_v51  ;;  %1934 = vmatprep.subr.mxu0 %v2411_v35 }
  0xd6   :  { %1978 = vmatpush3.msra.mxu1 %v2437_v51  ;;  %1935 = vmatpush3.msra.mxu0 %v2411_v35  ;;  %v2732_v35 = vand.u32 4294901760, %v92_v30  ;;  %v2744_v51 = vand.u32 4294901760, %v91_v31 }
  0xd7   :  { %1979 = vmatprep.subr.mxu1 %v2443_v53  ;;  %1936 = vmatprep.subr.mxu0 %v2428_v43 }
  0xd8   :  { %1980 = vmatpush3.msra.mxu1 %v2443_v53  ;;  %1937 = vmatpush3.msra.mxu0 %v2428_v43  ;;  %v2739_v43 = vand.u32 4294901760, %v2716_v28  ;;  %v2753_v53 = vand.u32 4294901760, %v2728_v33 }
  0xd9   :  { %1981 = vmatprep.subr.mxu1 %v2445_v54  ;;  %1938 = vmatprep.subr.mxu0 %v2431_v47 }
  0xda   :  { %1982 = vmatpush3.msra.mxu1 %v2445_v54  ;;  %1939 = vmatpush3.msra.mxu0 %v2431_v47  ;;  %v2742_v47 = vsub.f32 %v93_v24, %v2718_v29  ;;  %v2755_v54 = vand.u32 4294901760, %v90_v36  ;;  %v924_v17 = vsub.f32 %v2728_v33, %v2753_v53  ;;  %v83_v24 = vld [vmem:[#allocation2 + $0x8] sm:$0xff] }
  0xdb   :  { %1983 = vmatprep.subr.mxu1 %v2453_v59  ;;  %1940 = vmatprep.subr.mxu0 %v2440_v52 }
  0xdc   :  { %1984 = vmatpush3.msra.mxu1 %v2453_v59  ;;  %1941 = vmatpush3.msra.mxu0 %v2440_v52  ;;  %v910_v52 = vsub.f32 %v2704_v25, %v2725_v32  ;;  %v2760_v59 = vsub.f32 %v92_v30, %v2732_v35  ;;  %v2767_v1 = vand.u32 4294901760, %v2742_v47  ;;  %v2781_v38 = vsub.f32 %v90_v36, %v2755_v54 }
  0xdd   :  { %1985 = vmatprep.subr.mxu1 %v2468_v2  ;;  %1942 = vmatprep.subr.mxu0 %v2462_v0  ;;  %v925_v4 = vand.u32 4294901760, %v924_v17  ;;  %v2865_v17 = vsub.f32 %v84_v7, %v2839_v39 }
  0xde   :  { %1986 = vmatpush3.msra.mxu1 %v2468_v2  ;;  %1943 = vmatpush3.msra.mxu0 %v2462_v0  ;;  %v917_v0 = vsub.f32 %v2716_v28, %v2739_v43  ;;  %v2770_v2 = vsub.f32 %v91_v31, %v2744_v51  ;;  %v931_v41 = vsub.f32 %v2742_v47, %v2767_v1  ;;  %v2807_v5 = vand.u32 4294901760, %v2781_v38 }
  0xdf   :  { %1987 = vmatprep.subr.mxu1 %v2480_v9  ;;  %1944 = vmatprep.subr.mxu0 %v2474_v6 }
  0xe0   :  { %1988 = vmatpush3.msra.mxu1 %v2480_v9  ;;  %1945 = vmatpush3.msra.mxu0 %v2474_v6  ;;  %v2774_v6 = vand.u32 4294901760, %v89_v58  ;;  %v911_v9 = vand.u32 4294901760, %v910_v52  ;;  %v918_v50 = vand.u32 4294901760, %v917_v0  ;;  %v2797_v60 = vand.u32 4294901760, %v2770_v2  ;;  %v82_v52 = vld [vmem:[#allocation2] sm:$0xff] }
  0xe1   :  { %1989 = vmatprep.subr.mxu1 %v2492_v18  ;;  %1946 = vmatprep.subr.mxu0 %v2486_v16  ;;  %v2853_v0 = vsub.f32 %v85_v10, %v2827_v20  ;;  %v2867_v45 = vand.u32 4294901760, %v82_v52 }
  0xe2   :  { %1990 = vmatpush3.msra.mxu1 %v2492_v18  ;;  %1947 = vmatpush3.msra.mxu0 %v2486_v16  ;;  %v2786_v16 = vand.u32 4294901760, %v2760_v59  ;;  %v2788_v18 = vand.u32 4294901760, %v88_v8  ;;  %v945_v48 = vsub.f32 %v2770_v2, %v2797_v60 }
  0xe3   :  { %1991 = vmatprep.subr.mxu1 %v2504_v40  ;;  %1948 = vmatprep.subr.mxu0 %v2498_v37 }
  0xe4   :  { %1992 = vmatpush3.msra.mxu1 %v2504_v40  ;;  %1949 = vmatpush3.msra.mxu0 %v2498_v37  ;;  %v86_v40 = vld [vmem:[#allocation2 + $0x20] sm:$0xff]  ;;  %v2801_v37 = vsub.f32 %v89_v58, %v2774_v6  ;;  %v938_v14 = vsub.f32 %v2760_v59, %v2786_v16  ;;  %v2813_v15 = vsub.f32 %v88_v8, %v2788_v18 }
  0xe5   :  { %1994 = vmatmul.mubr.msk.f32.vlgmr.msra.gmra.mxu1 %vm77_vm2, %v2302_v55  ;;  %2031 = vmatprep.subr.mxu1 %v904_v61  ;;  %v2815_v21 = vand.u32 4294901760, %v86_v40 }
  0xe6   :  { %1950 = vmatprep.subr.mxu0 %v2510_v44  ;;  %2032 = vmatpush3.msra.mxu1 %v904_v61  ;;  %v2822_v11 = vand.u32 4294901760, %v2801_v37  ;;  %v939_v30 = vand.u32 4294901760, %v938_v14  ;;  %v2834_v31 = vand.u32 4294901760, %v2813_v15  ;;  %v2850_v61 = vand.u32 4294901760, %v2825_v13 }
  0xe7   :  { %1951 = vmatpush3.msra.mxu0 %v2510_v44  ;;  %2033 = vmatprep.subr.mxu1 %v911_v9  ;;  %v932_v44 = vand.u32 4294901760, %v931_v41  ;;  %v2837_v36 = vsub.f32 %v86_v40, %v2815_v21  ;;  %v2874_v40 = vand.u32 4294901760, %v2853_v0 }
  0xe8   :  { %1952 = vmatprep.subr.mxu0 %v2520_v49  ;;  %2034 = vmatpush3.msra.mxu1 %v911_v9  ;;  %v959_v58 = vsub.f32 %v2801_v37, %v2822_v11  ;;  %v966_v62 = vsub.f32 %v2813_v15, %v2834_v31  ;;  %v973_v41 = vsub.f32 %v2825_v13, %v2850_v61 }
  0xe9   :  { %1953 = vmatpush3.msra.mxu0 %v2520_v49  ;;  %2035 = vmatprep.subr.mxu1 %v918_v50  ;;  %v952_v49 = vsub.f32 %v2781_v38, %v2807_v5  ;;  %v2862_v9 = vand.u32 4294901760, %v2837_v36 }
  0xea   :  { %1954 = vmatprep.subr.mxu0 %v2530_v57  ;;  %2036 = vmatpush3.msra.mxu1 %v918_v50  ;;  %v960_v50 = vand.u32 4294901760, %v959_v58  ;;  %v967_v10 = vand.u32 4294901760, %v966_v62  ;;  %v974_v7 = vand.u32 4294901760, %v973_v41  ;;  %v2904_v58 = vpop.permute.xlu1 %62 }
  0xeb   :  { %1955 = vmatpush3.msra.mxu0 %v2530_v57  ;;  %2037 = vmatprep.subr.mxu1 %v925_v4  ;;  %v946_v57 = vand.u32 4294901760, %v945_v48  ;;  %v953_v8 = vand.u32 4294901760, %v952_v49  ;;  %v980_v14 = vsub.f32 %v2837_v36, %v2862_v9  ;;  %v2887_v48 = vsub.f32 %v82_v52, %v2867_v45 }
  0xec   :  { %1956 = vmatprep.subr.mxu0 %v2537_v63  ;;  %2038 = vmatpush3.msra.mxu1 %v925_v4  ;;  %v987_v49 = vsub.f32 %v2853_v0, %v2874_v40  ;;  %vm65_vm3 = vcmp.eq.s32.totalorder %v2553_v34, %v2904_v58 }
  0xed   :  { %1957 = vmatpush3.msra.mxu0 %v2537_v63  ;;  %2039 = vmatprep.subr.mxu1 %v932_v44  ;;  %v2855_v63 = vand.u32 4294901760, %v83_v24  ;;  %v2901_v52 = vand.u32 4294901760, %v2887_v48 }
  0xee   :  { %1959 = vmatmul.mubr.msk.f32.vlgmr.msra.gmra.mxu0 %vm77_vm2, %v2302_v55  ;;  %1996 = vmatprep.subr.mxu0 %v2682_v12 }
  0xef   :  { %2040 = vmatpush3.msra.mxu1 %v932_v44  ;;  %1997 = vmatpush3.msra.mxu0 %v2682_v12  ;;  %v2877_v4 = vsub.f32 %v83_v24, %v2855_v63  ;;  %v2884_v44 = vand.u32 4294901760, %v2865_v17 }
  0xf0   :  { %2041 = vmatprep.subr.mxu1 %v939_v30  ;;  %1998 = vmatprep.subr.mxu0 %v2688_v19 }
  0xf1   :  { %2042 = vmatpush3.msra.mxu1 %v939_v30  ;;  %1999 = vmatpush3.msra.mxu0 %v2688_v19  ;;  %v2894_v24 = vand.u32 4294901760, %v2877_v4  ;;  %v981_v30 = vand.u32 4294901760, %v980_v14  ;;  %v1552_v14 = vsel %vm65_vm3, 1.0, %v2301_v46 }
  0xf2   :  { %2043 = vmatprep.subr.mxu1 %v946_v57  ;;  %2000 = vmatprep.subr.mxu0 %v2697_v23 }
  0xf3   :  { %2044 = vmatpush3.msra.mxu1 %v946_v57  ;;  %2001 = vmatpush3.msra.mxu0 %v2697_v23  ;;  %v994_v57 = vsub.f32 %v2865_v17, %v2884_v44  ;;  %v1001_v62 = vsub.f32 %v2877_v4, %v2894_v24 }
  0xf4   :  { %2045 = vmatprep.subr.mxu1 %v953_v8  ;;  %2002 = vmatprep.subr.mxu0 %v2706_v26 }
  0xf5   :  { %2046 = vmatpush3.msra.mxu1 %v953_v8  ;;  %2003 = vmatpush3.msra.mxu0 %v2706_v26  ;;  %v988_v8 = vand.u32 4294901760, %v987_v49  ;;  %v995_v41 = vand.u32 4294901760, %v994_v57 }
  0xf6   :  { %2047 = vmatprep.subr.mxu1 %v960_v50  ;;  %2004 = vmatprep.subr.mxu0 %v2718_v29 }
  0xf7   :  { %2048 = vmatpush3.msra.mxu1 %v960_v50  ;;  %2005 = vmatpush3.msra.mxu0 %v2718_v29  ;;  %v880_v50 = vsub.f32 %v2575_v56, %v2575_v56  ;;  %v1002_v56 = vand.u32 4294901760, %v1001_v62 }
  0xf8   :  { %2049 = vmatprep.subr.mxu1 %v967_v10  ;;  %2006 = vmatprep.subr.mxu0 %v2732_v35 }
  0xf9   :  { %2050 = vmatpush3.msra.mxu1 %v967_v10  ;;  %2007 = vmatpush3.msra.mxu0 %v2732_v35  ;;  %v1008_v10 = vsub.f32 %v2887_v48, %v2901_v52 }
  0xfa   :  { %2051 = vmatprep.subr.mxu1 %v974_v7  ;;  %2008 = vmatprep.subr.mxu0 %v2744_v51 }
  0xfb   :  { %2052 = vmatpush3.msra.mxu1 %v974_v7  ;;  %2009 = vmatpush3.msra.mxu0 %v2744_v51  ;;  %v881_v7 = vand.u32 4294901760, %v880_v50  ;;  %v1009_v49 = vand.u32 4294901760, %v1008_v10 }
  0xfc   :  { %2053 = vmatprep.subr.mxu1 %v981_v30  ;;  %2010 = vmatprep.subr.mxu0 %v2755_v54 }
  0xfd   :  { %2054 = vmatpush3.msra.mxu1 %v981_v30  ;;  %2011 = vmatpush3.msra.mxu0 %v2755_v54  ;;  %v2926_v30 = vsub.f32 %v1552_v14, %v1552_v14  ;;  %v882_v46 = vsub.f32 %v880_v50, %v881_v7 }
  0xfe   :  { %2055 = vmatprep.subr.mxu1 %v988_v8  ;;  %2012 = vmatprep.subr.mxu0 %v2774_v6 }
  0xff   :  { %2056 = vmatpush3.msra.mxu1 %v988_v8  ;;  %2013 = vmatpush3.msra.mxu0 %v2774_v6  ;;  %v891_v57 = vand.u32 4294901760, %v2926_v30  ;;  %v883_v8 = vand.u32 4294901760, %v882_v46 }
 0x100   :  { %2057 = vmatprep.subr.mxu1 %v995_v41  ;;  %2014 = vmatprep.subr.mxu0 %v2788_v18 }
 0x101   :  { %2058 = vmatpush3.msra.mxu1 %v995_v41  ;;  %2015 = vmatpush3.msra.mxu0 %v2788_v18  ;;  %v892_v62 = vsub.f32 %v2926_v30, %v891_v57 }
 0x102   :  { %2059 = vmatprep.subr.mxu1 %v1002_v56  ;;  %2016 = vmatprep.subr.mxu0 %v2803_v3 }
 0x103   :  { %2060 = vmatpush3.msra.mxu1 %v1002_v56  ;;  %2063 = vmatprep.mubr.msk.f32.mxu1 %vm64_vm1, %v2302_v55  ;;  %v893_v41 = vand.u32 4294901760, %v892_v62 }
 0x104   :  { %2017 = vmatpush3.msra.mxu0 %v2803_v3  ;;  %2061 = vmatprep.subr.mxu1 %v1009_v49 }
 0x105   :  { %2018 = vmatprep.subr.mxu0 %v2815_v21  ;;  %2062 = vmatpush3.msra.mxu1 %v1009_v49 }
 0x106   :  { %2019 = vmatpush3.msra.mxu0 %v2815_v21  ;;  %2064 = vmatmul.mubr.msk.f32.vlgmr.msra.gmra.mxu1 %vm65_vm3, %v2302_v55 }
 0x107   :  { %2101 = vmatprep.subr.mxu1 %v2682_v12  ;;  %2020 = vmatprep.subr.mxu0 %v2827_v20 }
 0x108   :  { %2102 = vmatpush3.msra.mxu1 %v2682_v12  ;;  %2021 = vmatpush3.msra.mxu0 %v2827_v20 }
 0x109   :  { %2103 = vmatprep.subr.mxu1 %v2688_v19  ;;  %2133 = vmatprep.mubr.f32.mxu1 %v881_v7 }
 0x10a   :  { %2022 = vmatprep.subr.mxu0 %v2839_v39  ;;  %2104 = vmatpush3.msra.mxu1 %v2688_v19 }
 0x10b   :  { %2023 = vmatpush3.msra.mxu0 %v2839_v39  ;;  %2028 = vmatprep.mubr.f32.mxu0 %v883_v8  ;;  %v1569_v8 = vld [vmem:[%s3125_s5] ss:$0 sm:$0xff] }
 0x10c   :  { %2105 = vmatprep.subr.mxu1 %v2697_v23  ;;  %2024 = vmatprep.subr.mxu0 %v2855_v63 }
 0x10d   :  { %2106 = vmatpush3.msra.mxu1 %v2697_v23  ;;  %2025 = vmatpush3.msra.mxu0 %v2855_v63 }
 0x10e   :  { %2107 = vmatprep.subr.mxu1 %v2706_v26  ;;  %2026 = vmatprep.subr.mxu0 %v2867_v45 }
 0x10f   :  { %2108 = vmatpush3.msra.mxu1 %v2706_v26  ;;  %2027 = vmatpush3.msra.mxu0 %v2867_v45 }
 0x110   :  { %2109 = vmatprep.subr.mxu1 %v2718_v29  ;;  %2029 = vmatmul.mubr.f32.vlgmr.msra.gmra.mxu0 %v893_v41 }
 0x111   :  { %2066 = vmatprep.subr.mxu0 %v2695_v22  ;;  %2110 = vmatpush3.msra.mxu1 %v2718_v29 }
 0x112   :  { %2067 = vmatpush3.msra.mxu0 %v2695_v22  ;;  %2098 = vmatprep.mubr.f32.mxu0 %v880_v50  ;;  %v2304_v22 = vmov 2  }
 0x113   :  { %2111 = vmatprep.subr.mxu1 %v2732_v35  ;;  %2068 = vmatprep.subr.mxu0 %v2704_v25 }
 0x114   :  { %2112 = vmatpush3.msra.mxu1 %v2732_v35  ;;  %2069 = vmatpush3.msra.mxu0 %v2704_v25 }
 0x115   :  { %2113 = vmatprep.subr.mxu1 %v2744_v51  ;;  %2070 = vmatprep.subr.mxu0 %v2716_v28 }
 0x116   :  { %2114 = vmatpush3.msra.mxu1 %v2744_v51  ;;  %2071 = vmatpush3.msra.mxu0 %v2716_v28 }
 0x117   :  { %2115 = vmatprep.subr.mxu1 %v2755_v54  ;;  %2072 = vmatprep.subr.mxu0 %v2728_v33 }
 0x118   :  { %2116 = vmatpush3.msra.mxu1 %v2755_v54  ;;  %2073 = vmatpush3.msra.mxu0 %v2728_v33 }
 0x119   :  { %2117 = vmatprep.subr.mxu1 %v2774_v6  ;;  %2074 = vmatprep.subr.mxu0 %v2742_v47 }
 0x11a   :  { %2118 = vmatpush3.msra.mxu1 %v2774_v6  ;;  %2075 = vmatpush3.msra.mxu0 %v2742_v47 }
 0x11b   :  { %2119 = vmatprep.subr.mxu1 %v2788_v18  ;;  %2076 = vmatprep.subr.mxu0 %v2760_v59 }
 0x11c   :  { %2120 = vmatpush3.msra.mxu1 %v2788_v18  ;;  %2077 = vmatpush3.msra.mxu0 %v2760_v59 }
 0x11d   :  { %2121 = vmatprep.subr.mxu1 %v2803_v3  ;;  %2078 = vmatprep.subr.mxu0 %v2770_v2 }
 0x11e   :  { %2122 = vmatpush3.msra.mxu1 %v2803_v3  ;;  %2079 = vmatpush3.msra.mxu0 %v2770_v2 }
 0x11f   :  { %2123 = vmatprep.subr.mxu1 %v2815_v21  ;;  %2080 = vmatprep.subr.mxu0 %v2781_v38 }
 0x120   :  { %2124 = vmatpush3.msra.mxu1 %v2815_v21  ;;  %2081 = vmatpush3.msra.mxu0 %v2781_v38 }
 0x121   :  { %2125 = vmatprep.subr.mxu1 %v2827_v20  ;;  %2082 = vmatprep.subr.mxu0 %v2801_v37 }
 0x122   :  { %2126 = vmatpush3.msra.mxu1 %v2827_v20  ;;  %2083 = vmatpush3.msra.mxu0 %v2801_v37 }
 0x123   :  { %2127 = vmatprep.subr.mxu1 %v2839_v39  ;;  %2084 = vmatprep.subr.mxu0 %v2813_v15 }
 0x124   :  { %2128 = vmatpush3.msra.mxu1 %v2839_v39  ;;  %2085 = vmatpush3.msra.mxu0 %v2813_v15 }
 0x125   :  { %2129 = vmatprep.subr.mxu1 %v2855_v63  ;;  %2086 = vmatprep.subr.mxu0 %v2825_v13 }
 0x126   :  { %2130 = vmatpush3.msra.mxu1 %v2855_v63  ;;  %2087 = vmatpush3.msra.mxu0 %v2825_v13 }
 0x127   :  { %2131 = vmatprep.subr.mxu1 %v2867_v45  ;;  %2088 = vmatprep.subr.mxu0 %v2837_v36 }
 0x128   :  { %2132 = vmatpush3.msra.mxu1 %v2867_v45  ;;  %2089 = vmatpush3.msra.mxu0 %v2837_v36 }
 0x129   :  { %2134 = vmatmul.mubr.f32.vlgmr.msra.gmra.mxu1 %v891_v57  ;;  %2171 = vmatprep.subr.mxu1 %v2682_v12 }
 0x12a   :  { %2090 = vmatprep.subr.mxu0 %v2853_v0  ;;  %2172 = vmatpush3.msra.mxu1 %v2682_v12  ;;  %v2227_v12 = vld [vmem:[%s3120_s0] sm:$0xff] }
 0x12b   :  { %2203 = vmatprep.mubr.msk.f32.mxu1 %vm64_vm1, %v2302_v55  ;;  %2091 = vmatpush3.msra.mxu0 %v2853_v0 }
 0x12c   :  { %2173 = vmatprep.subr.mxu1 %v2688_v19  ;;  %2092 = vmatprep.subr.mxu0 %v2865_v17 }
 0x12d   :  { %2174 = vmatpush3.msra.mxu1 %v2688_v19  ;;  %2093 = vmatpush3.msra.mxu0 %v2865_v17  ;;  %v2228_v19 = vld [vmem:[%s3120_s0 + $0x8] sm:$0xff] }
 0x12e   :  { %2175 = vmatprep.subr.mxu1 %v2697_v23  ;;  %2094 = vmatprep.subr.mxu0 %v2877_v4 }
 0x12f   :  { %2176 = vmatpush3.msra.mxu1 %v2697_v23  ;;  %2095 = vmatpush3.msra.mxu0 %v2877_v4 }
 0x130   :  { %2177 = vmatprep.subr.mxu1 %v2706_v26  ;;  %2096 = vmatprep.subr.mxu0 %v2887_v48 }
 0x131   :  { %2178 = vmatpush3.msra.mxu1 %v2706_v26  ;;  %2097 = vmatpush3.msra.mxu0 %v2887_v48 }
 0x132   :  { %2179 = vmatprep.subr.mxu1 %v2718_v29  ;;  %2099 = vmatmul.mubr.f32.vlgmr.msra.gmra.mxu0 %v2926_v30 }
 0x133   :  { %2136 = vmatprep.subr.mxu0 %v2713_v27  ;;  %2180 = vmatpush3.msra.mxu1 %v2718_v29 }
 0x134   :  { %2137 = vmatpush3.msra.mxu0 %v2713_v27  ;;  %2168 = vmatprep.mubr.msk.f32.mxu0 %vm64_vm1, %v2302_v55 }
 0x135   :  { %2181 = vmatprep.subr.mxu1 %v2732_v35  ;;  %2138 = vmatprep.subr.mxu0 %v2725_v32 }
 0x136   :  { %2182 = vmatpush3.msra.mxu1 %v2732_v35  ;;  %2139 = vmatpush3.msra.mxu0 %v2725_v32 }
 0x137   :  { %2183 = vmatprep.subr.mxu1 %v2744_v51  ;;  %2140 = vmatprep.subr.mxu0 %v2739_v43 }
 0x138   :  { %2184 = vmatpush3.msra.mxu1 %v2744_v51  ;;  %2141 = vmatpush3.msra.mxu0 %v2739_v43 }
 0x139   :  { %2185 = vmatprep.subr.mxu1 %v2755_v54  ;;  %2142 = vmatprep.subr.mxu0 %v2753_v53 }
 0x13a   :  { %2186 = vmatpush3.msra.mxu1 %v2755_v54  ;;  %2143 = vmatpush3.msra.mxu0 %v2753_v53 }
 0x13b   :  { %2187 = vmatprep.subr.mxu1 %v2774_v6  ;;  %2144 = vmatprep.subr.mxu0 %v2767_v1 }
 0x13c   :  { %2188 = vmatpush3.msra.mxu1 %v2774_v6  ;;  %2145 = vmatpush3.msra.mxu0 %v2767_v1 }
 0x13d   :  { %2189 = vmatprep.subr.mxu1 %v2788_v18  ;;  %2146 = vmatprep.subr.mxu0 %v2786_v16 }
 0x13e   :  { %2190 = vmatpush3.msra.mxu1 %v2788_v18  ;;  %2147 = vmatpush3.msra.mxu0 %v2786_v16 }
 0x13f   :  { %2191 = vmatprep.subr.mxu1 %v2803_v3  ;;  %2148 = vmatprep.subr.mxu0 %v2797_v60 }
 0x140   :  { %2192 = vmatpush3.msra.mxu1 %v2803_v3  ;;  %2149 = vmatpush3.msra.mxu0 %v2797_v60 }
 0x141   :  { %2193 = vmatprep.subr.mxu1 %v2815_v21  ;;  %2150 = vmatprep.subr.mxu0 %v2807_v5 }
 0x142   :  { %2194 = vmatpush3.msra.mxu1 %v2815_v21  ;;  %2151 = vmatpush3.msra.mxu0 %v2807_v5 }
 0x143   :  { %2195 = vmatprep.subr.mxu1 %v2827_v20  ;;  %2152 = vmatprep.subr.mxu0 %v2822_v11 }
 0x144   :  { %2196 = vmatpush3.msra.mxu1 %v2827_v20  ;;  %2153 = vmatpush3.msra.mxu0 %v2822_v11 }
 0x145   :  { %2197 = vmatprep.subr.mxu1 %v2839_v39  ;;  %2154 = vmatprep.subr.mxu0 %v2834_v31 }
 0x146   :  { %2198 = vmatpush3.msra.mxu1 %v2839_v39  ;;  %2155 = vmatpush3.msra.mxu0 %v2834_v31 }
 0x147   :  { %2199 = vmatprep.subr.mxu1 %v2855_v63  ;;  %2156 = vmatprep.subr.mxu0 %v2850_v61 }
 0x148   :  { %2200 = vmatpush3.msra.mxu1 %v2855_v63  ;;  %2157 = vmatpush3.msra.mxu0 %v2850_v61 }
 0x149   :  { %2201 = vmatprep.subr.mxu1 %v2867_v45  ;;  %2158 = vmatprep.subr.mxu0 %v2862_v9 }
 0x14a   :  { %2202 = vmatpush3.msra.mxu1 %v2867_v45  ;;  %2159 = vmatpush3.msra.mxu0 %v2862_v9  ;;  %v1567_v9 = vld [vmem:[%s3123_s3] ss:$0 sm:$0xff] }
 0x14b   :  { %2204 = vmatmul.mubr.msk.f32.vlgmr.msra.gmra.mxu1 %vm65_vm3, %v2302_v55  ;;  %2160 = vmatprep.subr.mxu0 %v2874_v40 }
 0x14c   :  { %2161 = vmatpush3.msra.mxu0 %v2874_v40  ;;  %1485 = vperm.xlu0 %2223, %v2227_v12  }
 0x14d   :  { %2162 = vmatprep.subr.mxu0 %v2884_v44  ;;  %1490 = vperm.xlu1 %2224, %v2228_v19  }
 0x14e   :  { %2163 = vmatpush3.msra.mxu0 %v2884_v44  ;;  %v1568_v44 = vld [vmem:[%s3124_s4] ss:$0 sm:$0xff]  ;;  %s2305_s4 = smov [#allocation7]  }
 0x14f   :  { %2164 = vmatprep.subr.mxu0 %v2894_v24  ;;  %s1538_s19 = sshll.u32 %s2305_s4, 4  ;;  %s1539_s19 = int_to_ptr.vmem [resolvable:$true] %s1538_s19 }
 0x150   :  { %2165 = vmatpush3.msra.mxu0 %v2894_v24  ;;  %2226 = vset.pattern.permute.xlu0 %v2304_v22  ;;  %s2269_s20 = scalar_lea.vmem %s1539_s19, 256  ;;  %p2274_p11 = scmp.lt.s32.totalorder %s1539_s19, %s1539_s19 }
 0x151   :  { %2166 = vmatprep.subr.mxu0 %v2901_v52  ;;  %1509 = vperm.xlu0 %2226, %v2228_v19   ;;  %p2270_p10 = scmp.ne.s32.totalorder %s1539_s19, %s2269_s20  ;;  %p2275_p12 = scmp.lt.s32.totalorder %s2269_s20, %s2269_s20 }
 0x152   :  { %2167 = vmatpush3.msra.mxu0 %v2901_v52  ;;  %2225 = vset.pattern.permute.xlu1 %v2304_v22 }
 0x153   :  { %2169 = vmatmul.mubr.msk.f32.vlgmr.msra.gmra.mxu0 %vm65_vm3, %v2302_v55  ;;  %1505 = vperm.xlu1 %2225, %v2227_v12   ;;  %p2276_p13 = por %p2275_p12, %p2274_p11 }
 0x155   :  { %p2277_p0 = pnand %p2276_p13, %p2270_p10 }
 0x162   :  { %v1855_v25 = vpop.f32.mrf.mxu1 }
 0x164   :  { %v362_v28 = vpop.f32.mrf.mxu1 }
 0x16b   :  { %v1820_v23 = vpop.f32.mrf.mxu0 }
 0x16c   :  { %v369_v29 = vadd.f32 %v1855_v25, %v1820_v23 }
 0x16d   :  { %v201_v26 = vpop.f32.mrf.mxu0 }
 0x16e   :  { %v363_v35 = vadd.f32 %v362_v28, %v201_v26 }
 0x183   :  { %v1925_v32 = vpop.f32.mrf.mxu1 }
 0x185   :  { %v568_v53 = vpop.f32.mrf.mxu1 }
 0x18c   :  { %v1890_v27 = vpop.f32.mrf.mxu0 }
 0x18d   :  { %v480_v43 = vadd.f32 %v1890_v27, %v369_v29 }
 0x18e   :  { %v472_v33 = vpop.f32.mrf.mxu0 }
 0x18f   :  { %v473_v51 = vadd.f32 %v472_v33, %v363_v35  ;;  %v577_v54 = vadd.f32 %v1925_v32, %v480_v43 }
 0x191   :  { %v569_v55 = vadd.f32 %v568_v53, %v473_v51 }
 0x1a5   :  { %v1995_v59 = vpop.f32.mrf.mxu1 }
 0x1a7   :  { %v788_v38 = vpop.f32.mrf.mxu1 }
 0x1ae   :  { %v1960_v47 = vpop.f32.mrf.mxu0 }
 0x1af   :  { %v702_v34 = vadd.f32 %v1960_v47, %v577_v54 }
 0x1b0   :  { %v695_v1 = vpop.f32.mrf.mxu0 }
 0x1b1   :  { %v696_v6 = vadd.f32 %v695_v1, %v569_v55  ;;  %v795_v16 = vadd.f32 %v1995_v59, %v702_v34 }
 0x1b3   :  { %v789_v3 = vadd.f32 %v788_v38, %v696_v6 }
 0x1c6   :  { %v2065_v18 = vpop.f32.mrf.mxu1 }
 0x1c7   :  { %v1486_v13 = vpop.permute.xlu0 %1485 }
 0x1c8   :  { %v1046_v21 = vpop.f32.mrf.mxu1  ;;  %v1491_v61 = vpop.permute.xlu1 %1490  ;;  %v1499_v49 = vmul.f32 %v1567_v9, %v1486_v13 }
 0x1c9   :  { %v1500_v24 = vmul.f32 %v1567_v9, %v1491_v61 }
 0x1cc   :  { %v1510_v45 = vpop.permute.xlu0 %1509 }
 0x1cd   :  { %v1519_v14 = vmul.f32 %v1568_v44, %v1510_v45 }
 0x1ce   :  { %v1506_v50 = vpop.permute.xlu1 %1505 }
 0x1cf   :  { %v1518_v57 = vmul.f32 %v1568_v44, %v1506_v50 }
 0x1d0   :  { %v2030_v2 = vpop.f32.mrf.mxu0 }
 0x1d1   :  { %v896_v37 = vadd.f32 %v2030_v2, %v795_v16 }
 0x1d2   :  { %v885_v60 = vpop.f32.mrf.mxu0 }
 0x1d3   :  { %v886_v15 = vadd.f32 %v885_v60, %v789_v3  ;;  %v1053_v11 = vadd.f32 %v2065_v18, %v896_v37 }
 0x1d5   :  { %v1047_v39 = vadd.f32 %v1046_v21, %v886_v15 }
 0x1e9   :  { %v2135_v20 = vpop.f32.mrf.mxu1 }
 0x1eb   :  { %v1252_v63 = vpop.f32.mrf.mxu1 }
 0x1f2   :  { %v2100_v5 = vpop.f32.mrf.mxu0 }
 0x1f3   :  { %v1164_v36 = vadd.f32 %v2100_v5, %v1053_v11 }
 0x1f4   :  { %v1156_v31 = vpop.f32.mrf.mxu0 }
 0x1f5   :  { %v1157_v0 = vadd.f32 %v1156_v31, %v1047_v39  ;;  %v1261_v17 = vadd.f32 %v2135_v20, %v1164_v36 }
 0x1f7   :  { %v1253_v52 = vadd.f32 %v1252_v63, %v1157_v0 }
 0x20b   :  { %v2205_v40 = vpop.f32.mrf.mxu1 }
 0x20d   :  { %v1472_v7 = vpop.f32.mrf.mxu1 }
 0x213   :  { %v2170_v4 = vpop.f32.mrf.mxu0 }
 0x214   :  { %v1386_v48 = vadd.f32 %v2170_v4, %v1261_v17 }
 0x215   :  { %v1379_v58 = vpop.f32.mrf.mxu0 }
 0x216   :  { %v1479_v10 = vadd.f32 %v2205_v40, %v1386_v48  ;;  %v1380_v56 = vadd.f32 %v1379_v58, %v1253_v52 }
 0x218   :  { %v1502_v30 = vadd.f32 %v1500_v24, %v1479_v10  ;;  %v1473_v46 = vadd.f32 %v1472_v7, %v1380_v56 }
 0x21a   :  { %v1521_v62 = vadd.f32 %v1519_v14, %v1502_v30  ;;  %v1501_v41 = vadd.f32 %v1499_v49, %v1473_v46 }
 0x21c   :  { %v1530_v42 = vadd.f32 %v1569_v8, %v1521_v62  ;;  %v1520_v12 = vadd.f32 %v1518_v57, %v1501_v41 }
 0x21e   :  { %1532 = vst [vmem:[#allocation7 + $0x8] sm:$0xff] %v1530_v42  ;;  %v1529_v19 = vadd.f32 %v1569_v8, %v1520_v12 }
 0x220   :  { %1531 = vst [vmem:[#allocation7] sm:$0xff] %v1529_v19 }
 0x221   :  { %2280 = shalt.err (!%p2277_p0)
}
 0x222   :  { %1544 = dma.vmem_to_hbm [thread:$0]  %s1539_s19, 256, %s3126_s6, [#allocation4], %s2296_s24, %s2296_s24, %s2297_s25  }
 0x223   :  { %2293 = dma.done.wait [#allocation4], 256  }
 0x224   :  { %2294 = vsyncadd [#allocation4], 4294967040 }
 0x225   :  { %1548 = vsyncpa [#allocation3], 1 }
 0x226   :  { %1549 = vsyncpa [#allocation6], 1 }
 0x227   :  { %1550 = vsyncpa [#allocation4], 1 }

</bundles_post_ra>
